<compile_context>
chip_gen: v5e
topology: v5e:2x2
jax: 0.10.0
libtpu: 0.0.40
codegen_flags: <defaults>
</compile_context>

<pallas_src>
import jax
import jax.numpy as jnp
from jax.experimental import pallas as pl
from jax.experimental.pallas import tpu as pltpu

STATE_DIM = 64
HIDDEN = 256
DEFAULT_BLOCK_B = 2048  # batch tile: multiple of 128, per perf review (1024-2048)


def _round_up(x, m):
    return ((x + m - 1) // m) * m


def _disc_kernel(x_ref, w1_ref, b1_ref, w2_ref, b2_ref, w3_ref, b3_ref, o_ref):
    # Whole MLP fused in one kernel invocation per batch tile.
    cd = w1_ref.dtype
    # In-kernel cast of the streamed activations (post-DMA, VPU-cheap, hidden under MXU).
    x = x_ref[...].astype(cd)                                          # (tile_b, D)

    # Layer 1: MXU matmul, f32 accumulation, f32 bias + ReLU.
    h1 = jnp.dot(x, w1_ref[...], preferred_element_type=jnp.float32) + b1_ref[...]
    h1 = jnp.maximum(h1, 0.0).astype(cd)                               # (tile_b, 256)

    # Layer 2: MXU matmul, f32 accumulation, f32 bias + ReLU.
    h2 = jnp.dot(h1, w2_ref[...], preferred_element_type=jnp.float32) + b2_ref[...]
    h2 = jnp.maximum(h2, 0.0).astype(cd)                               # (tile_b, 256)

    # Layer 3: standard (M,K)@(K,1) matmul with W3 stationary — avoids the transposed
    # RHS / repeated-weight-push lowering risk of a (1,256) x (tile_b,256)^T dot_general.
    logit = jnp.dot(h2, w3_ref[...], preferred_element_type=jnp.float32)  # (tile_b, 1)

    o_ref[...] = jax.nn.sigmoid(logit + b3_ref[0]).astype(o_ref.dtype)


def discriminator_forward(state, params, *, block_b=DEFAULT_BLOCK_B,
                          compute_dtype=jnp.bfloat16):
    """state: (B, state_dim) float32 -> (B, 1) float32 probabilities in (0, 1).

    compute_dtype: dtype of the matmul *operands* (default bf16 = fast MXU path on
    v5e/v6e/v7x); accumulation, biases and the sigmoid epilogue are always float32.
    Pass jnp.float32 for bit-accurate f32 results.
    """
    w1, b1, w2, b2, w3, b3 = params
    B, D = state.shape
    assert w1.shape == (D, HIDDEN)
    cd = jnp.dtype(compute_dtype)

    # Batch tile: as large as block_b, never (much) larger than the batch.
    tile_b = min(block_b, _round_up(max(B, 1), 8))
    if 512 <= B <= block_b:
        # Ensure >=2 grid steps for mid/large batches so the "parallel" batch axis can
        # feed both of v7x's TensorCores; at these sizes the extra ~0.35 us step is noise.
        tile_b = min(tile_b, _round_up((B + 1) // 2, 128))
    num_tiles = pl.cdiv(B, tile_b)

    # Only the tiny weights are cast in the wrapper; `state` goes in its native dtype
    # (no extra HBM read+write pass over the batch before the kernel).
    w1c = w1.astype(cd)                                 # (D, HIDDEN)
    w2c = w2.astype(cd)                                 # (HIDDEN, HIDDEN)
    w3c = w3.reshape(HIDDEN, 1).astype(cd)              # (HIDDEN, 1) column, stationary
    b1f = b1.reshape(1, HIDDEN).astype(jnp.float32)
    b2f = b2.reshape(1, HIDDEN).astype(jnp.float32)
    b3f = b3.reshape(1).astype(jnp.float32)             # scalar, lives in SMEM

    full = lambda i: (0, 0)  # weights/biases: same resident block for every batch tile

    out = pl.pallas_call(
        _disc_kernel,
        out_shape=jax.ShapeDtypeStruct((B, 1), jnp.float32),
        grid_spec=pltpu.PrefetchScalarGridSpec(
            num_scalar_prefetch=0,
            grid=(num_tiles,),
            in_specs=[
                pl.BlockSpec((tile_b, D), lambda i: (i, 0)),          # streamed state tile
                pl.BlockSpec((D, HIDDEN), full),                      # W1 (resident)
                pl.BlockSpec((1, HIDDEN), full),                      # b1
                pl.BlockSpec((HIDDEN, HIDDEN), full),                 # W2 (resident)
                pl.BlockSpec((1, HIDDEN), full),                      # b2
                pl.BlockSpec((HIDDEN, 1), full),                      # W3 column (resident)
                pl.BlockSpec(memory_space=pltpu.MemorySpace.SMEM),    # b3 scalar
            ],
            out_specs=pl.BlockSpec((tile_b, 1), lambda i: (i, 0)),    # (B, 1) directly
        ),
        compiler_params=pltpu.CompilerParams(
            dimension_semantics=("parallel",),        # batch tiles shard across TCs (v7x)
            vmem_limit_bytes=48 * 1024 * 1024,        # headroom over v5e's 16 MiB default
        ),
    )(state, w1c, b1f, w2c, b2f, w3c, b3f)

    return out


def init_params(key, state_dim=STATE_DIM, hidden=HIDDEN):
    """Deterministic PyTorch-Linear-style init: U(-1/sqrt(fan_in), 1/sqrt(fan_in))."""
    ks = jax.random.split(key, 6)

    def lin(kw, kb, fan_in, w_shape, b_shape):
        bound = 1.0 / float(fan_in) ** 0.5
        w = jax.random.uniform(kw, w_shape, jnp.float32, -bound, bound)
        b = jax.random.uniform(kb, b_shape, jnp.float32, -bound, bound)
        return w, b

    w1, b1 = lin(ks[0], ks[1], state_dim, (state_dim, hidden), (1, hidden))
    w2, b2 = lin(ks[2], ks[3], hidden, (hidden, hidden), (1, hidden))
    w3, b3 = lin(ks[4], ks[5], hidden, (hidden, 1), (1,))   # W3 stored as a column
    return (w1, b1, w2, b2, w3, b3)


def _reference_forward(state, params):
    w1, b1, w2, b2, w3, b3 = params
    h1 = jnp.maximum(state @ w1 + b1, 0.0)
    h2 = jnp.maximum(h1 @ w2 + b2, 0.0)
    return jax.nn.sigmoid(h2 @ w3 + b3)


if __name__ == "__main__":
    key = jax.random.PRNGKey(0)
    k_param, k_x1, k_x2, k_x3 = jax.random.split(key, 4)
    params = init_params(k_param)

    # Tiny batch, f32 operands: single grid step, tile == batch, bit-tight check.
    state_small = jax.random.normal(k_x1, (8, STATE_DIM), dtype=jnp.float32)
    out_small = jax.block_until_ready(
        discriminator_forward(state_small, params, compute_dtype=jnp.float32))
    ref_small = _reference_forward(state_small, params)
    assert out_small.shape == (8, 1)
    assert jnp.allclose(out_small, ref_small, atol=1e-5, rtol=1e-5)

    # Ragged batch, multi-tile grid (block_b=128 -> 3 tiles, last one partial):
    # exercises the pad-free OOB-read / masked-write tail path, f32 operands.
    state_big = jax.random.normal(k_x2, (300, STATE_DIM), dtype=jnp.float32)
    ref_big = _reference_forward(state_big, params)
    out_multi = jax.block_until_ready(
        discriminator_forward(state_big, params, block_b=128, compute_dtype=jnp.float32))
    assert out_multi.shape == (300, 1)
    assert jnp.allclose(out_multi, ref_big, atol=1e-5, rtol=1e-5)

    # Default path (bf16 operands, f32 accumulation/epilogue), single big tile.
    out_bf16 = jax.block_until_ready(discriminator_forward(state_big, params))
    assert out_bf16.shape == (300, 1)
    assert jnp.allclose(out_bf16, ref_big, atol=2e-2, rtol=0.0)
    assert bool(jnp.all((out_bf16 > 0.0) & (out_bf16 < 1.0)))

    # Mid-size batch: exercises the >=2-tile split for v7x's two TensorCores.
    state_mid = jax.random.normal(k_x3, (600, STATE_DIM), dtype=jnp.float32)
    ref_mid = _reference_forward(state_mid, params)
    out_mid = jax.block_until_ready(discriminator_forward(state_mid, params))
    assert out_mid.shape == (600, 1)
    assert jnp.allclose(out_mid, ref_mid, atol=2e-2, rtol=0.0)

    print("KERNEL_OK")
</pallas_src>

<mosaic_0001>
module attributes {stable_mosaic.version = 11 : i64} {
  func.func @_disc_kernel(%arg0: i32, %arg1: memref<8x64xf32, #tpu.memory_space<vmem>>, %arg2: memref<64x256xf32, #tpu.memory_space<vmem>>, %arg3: memref<1x256xf32, #tpu.memory_space<vmem>>, %arg4: memref<256x256xf32, #tpu.memory_space<vmem>>, %arg5: memref<1x256xf32, #tpu.memory_space<vmem>>, %arg6: memref<256x1xf32, #tpu.memory_space<vmem>>, %arg7: memref<1xf32, #tpu.memory_space<smem>>, %arg8: memref<8x1xf32, #tpu.memory_space<vmem>>) attributes {dimension_semantics = [#tpu.dimension_semantics<parallel>], iteration_bounds = array<i64: 1>, scalar_prefetch = 0 : i64, scratch_operands = 0 : i64, tpu.core_type = #tpu.core_type<tc>, window_params = [{transform_indices = @transform_0, window_bounds = array<i64: 8, 64>}, {pipeline_mode = #tpu.pipeline_mode<synchronous>, transform_indices = @transform_1, window_bounds = array<i64: 64, 256>}, {pipeline_mode = #tpu.pipeline_mode<synchronous>, transform_indices = @transform_2, window_bounds = array<i64: 1, 256>}, {pipeline_mode = #tpu.pipeline_mode<synchronous>, transform_indices = @transform_3, window_bounds = array<i64: 256, 256>}, {pipeline_mode = #tpu.pipeline_mode<synchronous>, transform_indices = @transform_4, window_bounds = array<i64: 1, 256>}, {pipeline_mode = #tpu.pipeline_mode<synchronous>, transform_indices = @transform_5, window_bounds = array<i64: 256, 1>}, {transform_indices = @transform_6, window_bounds = array<i64: 1>}, {transform_indices = @transform_7, window_bounds = array<i64: 8, 1>}]} {
    %c0 = arith.constant 0 : index
    %c0_0 = arith.constant 0 : index
    %0 = vector.load %arg1[%c0, %c0_0] : memref<8x64xf32, #tpu.memory_space<vmem>>, vector<8x64xf32>
    %c0_1 = arith.constant 0 : index
    %c0_2 = arith.constant 0 : index
    %1 = vector.load %arg2[%c0_1, %c0_2] : memref<64x256xf32, #tpu.memory_space<vmem>>, vector<64x256xf32>
    %cst = arith.constant dense<0.000000e+00> : vector<8x256xf32>
    %2 = tpu.matmul %0, %1, %cst {dimension_numbers = #tpu.dot_dimension_numbers<[1], [0], [0], [1], [0, 0, 1, 1], [], []>} : vector<8x64xf32>, vector<64x256xf32>, vector<8x256xf32> -> vector<8x256xf32>
    %c0_3 = arith.constant 0 : index
    %c0_4 = arith.constant 0 : index
    %3 = vector.load %arg3[%c0_3, %c0_4] : memref<1x256xf32, #tpu.memory_space<vmem>>, vector<1x256xf32>
    %4 = vector.broadcast %3 : vector<1x256xf32> to vector<8x256xf32>
    %5 = arith.addf %2, %4 : vector<8x256xf32>
    %cst_5 = arith.constant 0.000000e+00 : f32
    %6 = vector.broadcast %cst_5 : f32 to vector<8x256xf32>
    %7 = arith.maximumf %5, %6 : vector<8x256xf32>
    %c0_6 = arith.constant 0 : index
    %c0_7 = arith.constant 0 : index
    %8 = vector.load %arg4[%c0_6, %c0_7] : memref<256x256xf32, #tpu.memory_space<vmem>>, vector<256x256xf32>
    %cst_8 = arith.constant dense<0.000000e+00> : vector<8x256xf32>
    %9 = tpu.matmul %7, %8, %cst_8 {dimension_numbers = #tpu.dot_dimension_numbers<[1], [0], [0], [1], [0, 0, 1, 1], [], []>} : vector<8x256xf32>, vector<256x256xf32>, vector<8x256xf32> -> vector<8x256xf32>
    %c0_9 = arith.constant 0 : index
    %c0_10 = arith.constant 0 : index
    %10 = vector.load %arg5[%c0_9, %c0_10] : memref<1x256xf32, #tpu.memory_space<vmem>>, vector<1x256xf32>
    %11 = vector.broadcast %10 : vector<1x256xf32> to vector<8x256xf32>
    %12 = arith.addf %9, %11 : vector<8x256xf32>
    %cst_11 = arith.constant 0.000000e+00 : f32
    %13 = vector.broadcast %cst_11 : f32 to vector<8x256xf32>
    %14 = arith.maximumf %12, %13 : vector<8x256xf32>
    %c0_12 = arith.constant 0 : index
    %c0_13 = arith.constant 0 : index
    %15 = vector.load %arg6[%c0_12, %c0_13] : memref<256x1xf32, #tpu.memory_space<vmem>>, vector<256x1xf32>
    %cst_14 = arith.constant dense<0.000000e+00> : vector<8x1xf32>
    %16 = tpu.matmul %14, %15, %cst_14 {dimension_numbers = #tpu.dot_dimension_numbers<[1], [0], [0], [1], [0, 0, 1, 1], [], []>} : vector<8x256xf32>, vector<256x1xf32>, vector<8x1xf32> -> vector<8x1xf32>
    %c0_15 = arith.constant 0 : index
    %17 = memref.load %arg7[%c0_15] : memref<1xf32, #tpu.memory_space<smem>>
    %18 = vector.broadcast %17 : f32 to vector<8x1xf32>
    %19 = arith.addf %16, %18 : vector<8x1xf32>
    %20 = arith.negf %19 : vector<8x1xf32>
    %21 = math.exp %20 : vector<8x1xf32>
    %cst_16 = arith.constant 1.000000e+00 : f32
    %22 = vector.broadcast %cst_16 : f32 to vector<8x1xf32>
    %23 = arith.addf %22, %21 : vector<8x1xf32>
    %24 = arith.divf %22, %23 : vector<8x1xf32>
    %c0_17 = arith.constant 0 : index
    %c0_18 = arith.constant 0 : index
    %25 = vector.load %arg8[%c0_17, %c0_18] : memref<8x1xf32, #tpu.memory_space<vmem>>, vector<8x1xf32>
    tpu.vector_store %arg8[%c0_17, %c0_18], %24 {strides = array<i32>} : memref<8x1xf32, #tpu.memory_space<vmem>>, vector<8x1xf32>,
    return
  }
  func.func @transform_0(%arg0: i32) -> (i32, i32) {
    %c0_i32 = arith.constant 0 : i32
    %c0_i32_0 = arith.constant 0 : i32
    return %arg0, %c0_i32 : i32, i32
  }
  func.func @transform_1(%arg0: i32) -> (i32, i32) {
    %c0_i32 = arith.constant 0 : i32
    %c0_i32_0 = arith.constant 0 : i32
    %c0_i32_1 = arith.constant 0 : i32
    return %c0_i32, %c0_i32_0 : i32, i32
  }
  func.func @transform_2(%arg0: i32) -> (i32, i32) {
    %c0_i32 = arith.constant 0 : i32
    %c0_i32_0 = arith.constant 0 : i32
    %c0_i32_1 = arith.constant 0 : i32
    return %c0_i32, %c0_i32_0 : i32, i32
  }
  func.func @transform_3(%arg0: i32) -> (i32, i32) {
    %c0_i32 = arith.constant 0 : i32
    %c0_i32_0 = arith.constant 0 : i32
    %c0_i32_1 = arith.constant 0 : i32
    return %c0_i32, %c0_i32_0 : i32, i32
  }
  func.func @transform_4(%arg0: i32) -> (i32, i32) {
    %c0_i32 = arith.constant 0 : i32
    %c0_i32_0 = arith.constant 0 : i32
    %c0_i32_1 = arith.constant 0 : i32
    return %c0_i32, %c0_i32_0 : i32, i32
  }
  func.func @transform_5(%arg0: i32) -> (i32, i32) {
    %c0_i32 = arith.constant 0 : i32
    %c0_i32_0 = arith.constant 0 : i32
    %c0_i32_1 = arith.constant 0 : i32
    return %c0_i32, %c0_i32_0 : i32, i32
  }
  func.func @transform_6(%arg0: i32) -> i32 {
    %c0_i32 = arith.constant 0 : i32
    %c0_i32_0 = arith.constant 0 : i32
    return %c0_i32 : i32
  }
  func.func @transform_7(%arg0: i32) -> (i32, i32) {
    %c0_i32 = arith.constant 0 : i32
    %c0_i32_0 = arith.constant 0 : i32
    return %arg0, %c0_i32 : i32, i32
  }
}

</mosaic_0001>

<bundles_post_ra>
// kernel: tpu_custom_call.1
= control target key start
LH: loop header
LB: loop body
LE: loop exit
PB: predicated region body
PF: predicated region fallthrough
CT: control target
= control target key end

     0   :  { %13 = vsyncpa [#allocation4], 0  ;;  %s400_s27 = smov [#allocation3]   ;;  %s401_s29 = smov 256   ;;  %s605_s0 = inlined_call_operand.vmem [shape: f32[8,64], index: 0, kind: input, shape index: {}]   ;;  %s606_s1 = inlined_call_operand.vmem [shape: f32[64,256], index: 1, kind: input, shape index: {}]   ;;  %s607_s2 = inlined_call_operand.vmem [shape: f32[1,256], index: 2, kind: input, shape index: {}]   ;;  %s608_s3 = inlined_call_operand.hbm [shape: f32[256,256], index: 3, kind: input, shape index: {}]   ;;  %s609_s4 = inlined_call_operand.vmem [shape: f32[1,256], index: 4, kind: input, shape index: {}]   ;;  %s610_s5 = inlined_call_operand.vmem [shape: f32[256,1], index: 5, kind: input, shape index: {}]   ;;  %s611_s6 = inlined_call_operand.<no memory space> [shape: f32[1], index: 6, kind: input, shape index: {}]   ;;  %s612_s7 = inlined_call_operand.vmem [shape: f32[8,1], index: 7, kind: output, shape index: {}]  }
   0x1   :  { %s24_s26 = sshll.u32 %s608_s3, 4  ;;  %s26_s28 = sshll.u32 %s400_s27, 4  ;;  %s25_s26 = int_to_ptr.hbm [resolvable:$true] %s24_s26  ;;  %s27_s28 = int_to_ptr.vmem [resolvable:$true] %s26_s28 }
   0x2   :  { %s402_s30 = smov 16  }
   0x3   :  { %32 = dma.hbm_to_vmem [thread:$0]  %s25_s26, 8192, %s27_s28, [#allocation4], %s401_s29, %s401_s29, %s402_s30  }
   0x4   :  { %398 = dma.done.wait [#allocation4], 8192  }
   0x5   :  { %399 = vsyncadd [#allocation4], 4294959104  ;;  %v58_v0 = vld [vmem:[%s606_s1 + $0x70] sm:$0xff]  ;;  %v56_v1 = vld [vmem:[%s606_s1 + $0x60] sm:$0xff]  ;;  %vm66_vm0 = vcmask 523264   ;;  %vm357_vm4 = vcmask 7168  }
   0x6   :  { %v59_v2 = vld [vmem:[%s606_s1 + $0x78] sm:$0xff]  ;;  %78 = vmatpush.msra.mxu0 %v58_v0  ;;  %v57_v3 = vld [vmem:[%s606_s1 + $0x68] sm:$0xff]  ;;  %v54_v4 = vld [vmem:[%s606_s1 + $0x50] sm:$0xff] }
   0x7   :  { %98 = vmatpush.msra.mxu1 %v59_v2  ;;  %v55_v5 = vld [vmem:[%s606_s1 + $0x58] sm:$0xff]  ;;  %v52_v6 = vld [vmem:[%s606_s1 + $0x40] sm:$0xff]  ;;  %v53_v7 = vld [vmem:[%s606_s1 + $0x48] sm:$0xff] }
   0x8   :  { %79 = vmatpush.msra.mxu0 %v56_v1  ;;  %v50_v8 = vld [vmem:[%s606_s1 + $0x30] sm:$0xff]  ;;  %v51_v10 = vld [vmem:[%s606_s1 + $0x38] sm:$0xff]  ;;  %v140_v11 = vld [vmem:[#allocation3 + $0xe0] sm:$0xff] }
   0x9   :  { %99 = vmatpush.msra.mxu1 %v57_v3  ;;  %v142_v9 = vld [vmem:[#allocation3 + $0xf0] sm:$0xff]  ;;  %v48_v14 = vld [vmem:[%s606_s1 + $0x20] sm:$0xff]  ;;  %v49_v15 = vld [vmem:[%s606_s1 + $0x28] sm:$0xff] }
   0xa   :  { %80 = vmatpush.msra.mxu0 %v54_v4  ;;  %182 = vmatpush.msra.mxu2 %v142_v9  ;;  %v174_v12 = vld [vmem:[#allocation3 + $0x1f0] sm:$0xff]  ;;  %v172_v16 = vld [vmem:[#allocation3 + $0x1e0] sm:$0xff]  ;;  %v47_v20 = vld [vmem:[%s606_s1 + $0x18] sm:$0xff] }
   0xb   :  { %100 = vmatpush.msra.mxu1 %v55_v5  ;;  %v138_v13 = vld [vmem:[#allocation3 + $0xd0] sm:$0xff]  ;;  %202 = vmatpush.msra.mxu3 %v174_v12  ;;  %v136_v17 = vld [vmem:[#allocation3 + $0xc0] sm:$0xff]  ;;  %v45_v24 = vld [vmem:[%s606_s1 + $0x8] sm:$0xff] }
   0xc   :  { %81 = vmatpush.msra.mxu0 %v52_v6  ;;  %183 = vmatpush.msra.mxu2 %v140_v11  ;;  %v170_v18 = vld [vmem:[#allocation3 + $0x1d0] sm:$0xff]  ;;  %v168_v22 = vld [vmem:[#allocation3 + $0x1c0] sm:$0xff]  ;;  %v143_v26 = vld [vmem:[#allocation3 + $0xf8] sm:$0xff] }
   0xd   :  { %101 = vmatpush.msra.mxu1 %v53_v7  ;;  %v46_v19 = vld [vmem:[%s606_s1 + $0x10] sm:$0xff]  ;;  %203 = vmatpush.msra.mxu3 %v172_v16  ;;  %v44_v23 = vld [vmem:[%s606_s1] sm:$0xff]  ;;  %v175_v27 = vld [vmem:[#allocation3 + $0x1f8] sm:$0xff] }
   0xe   :  { %82 = vmatpush.msra.mxu0 %v50_v8  ;;  %184 = vmatpush.msra.mxu2 %v138_v13  ;;  %v134_v21 = vld [vmem:[#allocation3 + $0xb0] sm:$0xff]  ;;  %v43_v25 = vld [vmem:[%s605_s0] sm:$0xff]  ;;  %v141_v30 = vld [vmem:[#allocation3 + $0xe8] sm:$0xff] }
   0xf   :  { %102 = vmatpush.msra.mxu1 %v51_v10  ;;  %204 = vmatpush.msra.mxu3 %v170_v18  ;;  %v132_v28 = vld [vmem:[#allocation3 + $0xa0] sm:$0xff]  ;;  %v166_v29 = vld [vmem:[#allocation3 + $0x1b0] sm:$0xff]  ;;  %v173_v31 = vld [vmem:[#allocation3 + $0x1e8] sm:$0xff] }
  0x10   :  { %83 = vmatpush.msra.mxu0 %v48_v14  ;;  %185 = vmatpush.msra.mxu2 %v136_v17  ;;  %v130_v32 = vld [vmem:[#allocation3 + $0x90] sm:$0xff]  ;;  %v164_v33 = vld [vmem:[#allocation3 + $0x1a0] sm:$0xff]  ;;  %v139_v34 = vld [vmem:[#allocation3 + $0xd8] sm:$0xff] }
  0x11   :  { %103 = vmatpush.msra.mxu1 %v49_v15  ;;  %205 = vmatpush.msra.mxu3 %v168_v22  ;;  %v171_v35 = vld [vmem:[#allocation3 + $0x1d8] sm:$0xff]  ;;  %v128_v36 = vld [vmem:[#allocation3 + $0x80] sm:$0xff]  ;;  %v162_v37 = vld [vmem:[#allocation3 + $0x190] sm:$0xff] }
  0x12   :  { %84 = vmatpush.msra.mxu0 %v46_v19  ;;  %186 = vmatpush.msra.mxu2 %v134_v21  ;;  %v137_v38 = vld [vmem:[#allocation3 + $0xc8] sm:$0xff]  ;;  %v126_v40 = vld [vmem:[#allocation3 + $0x70] sm:$0xff]  ;;  %v160_v41 = vld [vmem:[#allocation3 + $0x180] sm:$0xff] }
  0x13   :  { %104 = vmatpush.msra.mxu1 %v47_v20  ;;  %206 = vmatpush.msra.mxu3 %v166_v29  ;;  %v169_v39 = vld [vmem:[#allocation3 + $0x1c8] sm:$0xff]  ;;  %v135_v42 = vld [vmem:[#allocation3 + $0xb8] sm:$0xff]  ;;  %v124_v44 = vld [vmem:[#allocation3 + $0x60] sm:$0xff] }
  0x14   :  { %85 = vmatpush.msra.mxu0 %v44_v23  ;;  %187 = vmatpush.msra.mxu2 %v132_v28  ;;  %v167_v43 = vld [vmem:[#allocation3 + $0x1b8] sm:$0xff]  ;;  %v158_v45 = vld [vmem:[#allocation3 + $0x170] sm:$0xff]  ;;  %v133_v46 = vld [vmem:[#allocation3 + $0xa8] sm:$0xff] }
  0x15   :  { %105 = vmatpush.msra.mxu1 %v45_v24  ;;  %364 = vmatmul.msk.f32.vlgmr.msra.gmra.mxu0 %vm66_vm0, %v43_v25  ;;  %v165_v47 = vld [vmem:[#allocation3 + $0x1a8] sm:$0xff]  ;;  %v122_v48 = vld [vmem:[#allocation3 + $0x50] sm:$0xff]  ;;  %v156_v49 = vld [vmem:[#allocation3 + $0x160] sm:$0xff] }
  0x16   :  { %365 = vmatmul.msk.f32.vlgmr.msra.gmra.mxu1 %vm66_vm0, %v43_v25  ;;  %222 = vmatpush.msrb.mxu0 %v143_v26  ;;  %v131_v50 = vld [vmem:[#allocation3 + $0x98] sm:$0xff]  ;;  %v120_v52 = vld [vmem:[#allocation3 + $0x40] sm:$0xff]  ;;  %v154_v53 = vld [vmem:[#allocation3 + $0x150] sm:$0xff] }
  0x17   :  { %242 = vmatpush.msrb.mxu1 %v175_v27  ;;  %188 = vmatpush.msra.mxu2 %v130_v32  ;;  %v163_v51 = vld [vmem:[#allocation3 + $0x198] sm:$0xff]  ;;  %v129_v54 = vld [vmem:[#allocation3 + $0x88] sm:$0xff]  ;;  %v118_v56 = vld [vmem:[#allocation3 + $0x30] sm:$0xff] }
  0x18   :  { %223 = vmatpush.msrb.mxu0 %v141_v30  ;;  %207 = vmatpush.msra.mxu3 %v164_v33  ;;  %v161_v55 = vld [vmem:[#allocation3 + $0x188] sm:$0xff]  ;;  %v152_v57 = vld [vmem:[#allocation3 + $0x140] sm:$0xff]  ;;  %v127_v58 = vld [vmem:[#allocation3 + $0x78] sm:$0xff] }
  0x19   :  { %243 = vmatpush.msrb.mxu1 %v173_v31  ;;  %189 = vmatpush.msra.mxu2 %v128_v36  ;;  %v159_v59 = vld [vmem:[#allocation3 + $0x178] sm:$0xff]  ;;  %v125_v60 = vld [vmem:[#allocation3 + $0x68] sm:$0xff]  ;;  %v116_v3 = vld [vmem:[#allocation3 + $0x20] sm:$0xff] }
  0x1a   :  { %224 = vmatpush.msrb.mxu0 %v139_v34  ;;  %208 = vmatpush.msra.mxu3 %v162_v37  ;;  %v157_v61 = vld [vmem:[#allocation3 + $0x168] sm:$0xff]  ;;  %v123_v62 = vld [vmem:[#allocation3 + $0x58] sm:$0xff]  ;;  %v150_v4 = vld [vmem:[#allocation3 + $0x130] sm:$0xff] }
  0x1b   :  { %244 = vmatpush.msrb.mxu1 %v171_v35  ;;  %190 = vmatpush.msra.mxu2 %v126_v40  ;;  %v155_v63 = vld [vmem:[#allocation3 + $0x158] sm:$0xff]  ;;  %v121_v0 = vld [vmem:[#allocation3 + $0x48] sm:$0xff]  ;;  %v114_v7 = vld [vmem:[#allocation3 + $0x10] sm:$0xff] }
  0x1c   :  { %225 = vmatpush.msrb.mxu0 %v137_v38  ;;  %209 = vmatpush.msra.mxu3 %v160_v41  ;;  %v153_v1 = vld [vmem:[#allocation3 + $0x148] sm:$0xff]  ;;  %v119_v2 = vld [vmem:[#allocation3 + $0x38] sm:$0xff]  ;;  %v148_v8 = vld [vmem:[#allocation3 + $0x120] sm:$0xff] }
  0x1d   :  { %245 = vmatpush.msrb.mxu1 %v169_v39  ;;  %191 = vmatpush.msra.mxu2 %v124_v44  ;;  %v117_v5 = vld [vmem:[#allocation3 + $0x28] sm:$0xff]  ;;  %v151_v6 = vld [vmem:[#allocation3 + $0x138] sm:$0xff]  ;;  %v112_v11 = vld [vmem:[#allocation3] sm:$0xff] }
  0x1e   :  { %226 = vmatpush.msrb.mxu0 %v135_v42  ;;  %210 = vmatpush.msra.mxu3 %v158_v45  ;;  %v115_v9 = vld [vmem:[#allocation3 + $0x18] sm:$0xff]  ;;  %v149_v10 = vld [vmem:[#allocation3 + $0x128] sm:$0xff]  ;;  %v146_v12 = vld [vmem:[#allocation3 + $0x110] sm:$0xff] }
  0x1f   :  { %246 = vmatpush.msrb.mxu1 %v167_v43  ;;  %192 = vmatpush.msra.mxu2 %v122_v48  ;;  %v113_v13 = vld [vmem:[#allocation3 + $0x8] sm:$0xff]  ;;  %v147_v14 = vld [vmem:[#allocation3 + $0x118] sm:$0xff]  ;;  %v144_v15 = vld [vmem:[#allocation3 + $0x100] sm:$0xff] }
  0x20   :  { %227 = vmatpush.msrb.mxu0 %v133_v46  ;;  %211 = vmatpush.msra.mxu3 %v156_v49  ;;  %v145_v16 = vld [vmem:[#allocation3 + $0x108] sm:$0xff]  ;;  %v295_v17 = vld [vmem:[%s610_s5 + $0xf8] sm:$0xff]  ;;  %v294_v18 = vld [vmem:[%s610_s5 + $0xf0] sm:$0xff] }
  0x21   :  { %247 = vmatpush.msrb.mxu1 %v165_v47  ;;  %193 = vmatpush.msra.mxu2 %v120_v52  ;;  %v279_v19 = vld [vmem:[%s610_s5 + $0x78] sm:$0xff]  ;;  %v278_v20 = vld [vmem:[%s610_s5 + $0x70] sm:$0xff]  ;;  %v293_v21 = vld [vmem:[%s610_s5 + $0xe8] sm:$0xff] }
  0x22   :  { %228 = vmatpush.msrb.mxu0 %v131_v50  ;;  %212 = vmatpush.msra.mxu3 %v154_v53  ;;  %v277_v22 = vld [vmem:[%s610_s5 + $0x68] sm:$0xff]  ;;  %v292_v23 = vld [vmem:[%s610_s5 + $0xe0] sm:$0xff]  ;;  %v291_v25 = vld [vmem:[%s610_s5 + $0xd8] sm:$0xff] }
  0x23   :  { %248 = vmatpush.msrb.mxu1 %v163_v51  ;;  %194 = vmatpush.msra.mxu2 %v118_v56  ;;  %v276_v24 = vld [vmem:[%s610_s5 + $0x60] sm:$0xff]  ;;  %v275_v26 = vld [vmem:[%s610_s5 + $0x58] sm:$0xff]  ;;  %v290_v27 = vld [vmem:[%s610_s5 + $0xd0] sm:$0xff] }
  0x24   :  { %229 = vmatpush.msrb.mxu0 %v129_v54  ;;  %213 = vmatpush.msra.mxu3 %v152_v57  ;;  %v274_v28 = vld [vmem:[%s610_s5 + $0x50] sm:$0xff]  ;;  %v289_v29 = vld [vmem:[%s610_s5 + $0xc8] sm:$0xff]  ;;  %v288_v31 = vld [vmem:[%s610_s5 + $0xc0] sm:$0xff] }
  0x25   :  { %249 = vmatpush.msrb.mxu1 %v161_v55  ;;  %195 = vmatpush.msra.mxu2 %v116_v3  ;;  %v273_v30 = vld [vmem:[%s610_s5 + $0x48] sm:$0xff]  ;;  %v272_v32 = vld [vmem:[%s610_s5 + $0x40] sm:$0xff]  ;;  %v287_v33 = vld [vmem:[%s610_s5 + $0xb8] sm:$0xff] }
  0x26   :  { %230 = vmatpush.msrb.mxu0 %v127_v58  ;;  %214 = vmatpush.msra.mxu3 %v150_v4  ;;  %v271_v34 = vld [vmem:[%s610_s5 + $0x38] sm:$0xff]  ;;  %v286_v35 = vld [vmem:[%s610_s5 + $0xb0] sm:$0xff]  ;;  %v285_v36 = vld [vmem:[%s610_s5 + $0xa8] sm:$0xff] }
  0x27   :  { %250 = vmatpush.msrb.mxu1 %v159_v59  ;;  %196 = vmatpush.msra.mxu2 %v114_v7  ;;  %v60_v37 = vld [vmem:[%s607_s2] sm:$0x3]  ;;  %v270_v47 = vld [vmem:[%s610_s5 + $0x30] sm:$0xff]  ;;  %v283_v48 = vld [vmem:[%s610_s5 + $0x98] sm:$0xff]  ;;  %v297_v7 = vstv %s611_s6 }
  0x28   :  { %231 = vmatpush.msrb.mxu0 %v125_v60  ;;  %215 = vmatpush.msra.mxu3 %v148_v8  ;;  %v284_v38 = vld [vmem:[%s610_s5 + $0xa0] sm:$0xff]  ;;  %v62_v39 = vperm.slane %v60_v37, 0  ;;  %v63_v40 = vperm.slane %v60_v37, 1  ;;  %v269_v49 = vld [vmem:[%s610_s5 + $0x28] sm:$0xff]  ;;  %v282_v50 = vld [vmem:[%s610_s5 + $0x90] sm:$0xff] }
  0x29   :  { %251 = vmatpush.msrb.mxu1 %v157_v61  ;;  %197 = vmatpush.msra.mxu2 %v112_v11  ;;  %v268_v51 = vld [vmem:[%s610_s5 + $0x20] sm:$0xff]  ;;  %v281_v52 = vld [vmem:[%s610_s5 + $0x88] sm:$0xff]  ;;  %v267_v53 = vld [vmem:[%s610_s5 + $0x18] sm:$0xff] }
  0x2a   :  { %232 = vmatpush.msrb.mxu0 %v123_v62  ;;  %216 = vmatpush.msra.mxu3 %v146_v12  ;;  %v280_v54 = vld [vmem:[%s610_s5 + $0x80] sm:$0xff]  ;;  %v266_v55 = vld [vmem:[%s610_s5 + $0x10] sm:$0xff]  ;;  %v265_v56 = vld [vmem:[%s610_s5 + $0x8] sm:$0xff] }
  0x2b   :  { %252 = vmatpush.msrb.mxu1 %v155_v63  ;;  %298 = vmatpush.msrb.mxu2 %v279_v19  ;;  %v264_v57 = vld [vmem:[%s610_s5] sm:$0xff] }
  0x2c   :  { %233 = vmatpush.msrb.mxu0 %v121_v0  ;;  %217 = vmatpush.msra.mxu3 %v144_v15  ;;  %v176_v58 = vld [vmem:[%s609_s4] sm:$0x3] }
  0x2d   :  { %253 = vmatpush.msrb.mxu1 %v153_v1  ;;  %299 = vmatpush.msrb.mxu2 %v278_v20  ;;  %v179_v59 = vperm.slane %v176_v58, 1  ;;  %v178_v0 = vperm.slane %v176_v58, 0 }
  0x2e   :  { %234 = vmatpush.msrb.mxu0 %v119_v2  ;;  %318 = vmatpush.msrb.mxu3 %v295_v17 }
  0x2f   :  { %254 = vmatpush.msrb.mxu1 %v151_v6  ;;  %300 = vmatpush.msrb.mxu2 %v277_v22 }
  0x30   :  { %235 = vmatpush.msrb.mxu0 %v117_v5  ;;  %319 = vmatpush.msrb.mxu3 %v294_v18 }
  0x31   :  { %255 = vmatpush.msrb.mxu1 %v149_v10  ;;  %301 = vmatpush.msrb.mxu2 %v276_v24 }
  0x32   :  { %236 = vmatpush.msrb.mxu0 %v115_v9  ;;  %320 = vmatpush.msrb.mxu3 %v293_v21 }
  0x33   :  { %256 = vmatpush.msrb.mxu1 %v147_v14  ;;  %302 = vmatpush.msrb.mxu2 %v275_v26 }
  0x34   :  { %237 = vmatpush.msrb.mxu0 %v113_v13  ;;  %321 = vmatpush.msrb.mxu3 %v292_v23 }
  0x35   :  { %257 = vmatpush.msrb.mxu1 %v145_v16  ;;  %303 = vmatpush.msrb.mxu2 %v274_v28 }
  0x36   :  { %322 = vmatpush.msrb.mxu3 %v291_v25 }
  0x37   :  { %304 = vmatpush.msrb.mxu2 %v273_v30 }
  0x38   :  { %323 = vmatpush.msrb.mxu3 %v290_v27 }
  0x39   :  { %305 = vmatpush.msrb.mxu2 %v272_v32 }
  0x3a   :  { %324 = vmatpush.msrb.mxu3 %v289_v29 }
  0x3b   :  { %306 = vmatpush.msrb.mxu2 %v271_v34 }
  0x3c   :  { %325 = vmatpush.msrb.mxu3 %v288_v31 }
  0x3d   :  { %307 = vmatpush.msrb.mxu2 %v270_v47 }
  0x3e   :  { %326 = vmatpush.msrb.mxu3 %v287_v33 }
  0x3f   :  { %308 = vmatpush.msrb.mxu2 %v269_v49 }
  0x40   :  { %327 = vmatpush.msrb.mxu3 %v286_v35 }
  0x41   :  { %309 = vmatpush.msrb.mxu2 %v268_v51 }
  0x42   :  { %328 = vmatpush.msrb.mxu3 %v285_v36 }
  0x43   :  { %310 = vmatpush.msrb.mxu2 %v267_v53 }
  0x44   :  { %329 = vmatpush.msrb.mxu3 %v284_v38 }
  0x45   :  { %311 = vmatpush.msrb.mxu2 %v266_v55 }
  0x46   :  { %330 = vmatpush.msrb.mxu3 %v283_v48 }
  0x47   :  { %312 = vmatpush.msrb.mxu2 %v265_v56 }
  0x48   :  { %331 = vmatpush.msrb.mxu3 %v282_v50 }
  0x49   :  { %313 = vmatpush.msrb.mxu2 %v264_v57 }
  0x4a   :  { %332 = vmatpush.msrb.mxu3 %v281_v52 }
  0x4c   :  { %333 = vmatpush.msrb.mxu3 %v280_v54 }
  0x92   :  { %v87_v41 = vpop.f32.mrf.mxu0 }
  0x93   :  { %v107_v42 = vpop.f32.mrf.mxu1  ;;  %v88_v43 = vadd.f32 %v87_v41, %v62_v39 }
  0x94   :  { %v108_v44 = vadd.f32 %v107_v42, %v63_v40 }
  0x95   :  { %v110_v45 = vmax.f32 %v88_v43, 0.0 }
  0x96   :  { %v111_v46 = vmax.f32 %v108_v44, 0.0 }
  0x97   :  { %198 = vmatmul.f32.vlgmr.msra.gmra.mxu2 %v110_v45  ;;  %238 = vmatmul.f32.vlgmr.msrb.gmra.mxu0 %v110_v45 }
  0x98   :  { %218 = vmatmul.f32.vlgmr.msra.gmra.mxu3 %v111_v46  ;;  %258 = vmatmul.f32.vlgmr.msrb.gmra.mxu1 %v111_v46 }
 0x114   :  { %v239_v60 = vpop.f32.mrf.mxu0 }
 0x115   :  { %v240_v61 = vadd.f32 %v239_v60, %v179_v59  ;;  %v259_v62 = vpop.f32.mrf.mxu1 }
 0x117   :  { %v260_v63 = vadd.f32 %v259_v62, %v240_v61 }
 0x119   :  { %v263_v1 = vmax.f32 %v260_v63, 0.0 }
 0x11a   :  { %v199_v2 = vpop.f32.mrf.mxu2 }
 0x11b   :  { %v200_v3 = vadd.f32 %v199_v2, %v178_v0  ;;  %334 = vmatmul.f32.vlgmr.msrb.gmra.mxu3 %v263_v1  ;;  %v219_v4 = vpop.f32.mrf.mxu3 }
 0x11d   :  { %v220_v5 = vadd.f32 %v219_v4, %v200_v3 }
 0x11f   :  { %v262_v6 = vmax.f32 %v220_v5, 0.0 }
 0x121   :  { %314 = vmatmul.f32.vlgmr.msrb.gmra.mxu2 %v262_v6 }
 0x19e   :  { %v335_v10 = vpop.f32.mrf.mxu3 }
 0x1a4   :  { %v315_v8 = vpop.f32.mrf.mxu2 }
 0x1a5   :  { %v316_v9 = vadd.f32 %v315_v8, %v297_v7 }
 0x1a7   :  { %v336_v11 = vadd.f32 %v335_v10, %v316_v9 }
 0x1a9   :  { %v366_v12 = vmul.f32 -1.442695, %v336_v11 }
 0x1ab   :  { %370 = vpow2.f32 %v366_v12 }
 0x1b1   :  { %v371_v13 = vpop.eup %370 }
 0x1b2   :  { %v341_v14 = vadd.f32 1.0, %v371_v13 }
 0x1b4   :  { %372 = vrcp.f32 %v341_v14  ;;  %v353_v18 = vand.u32 2147483648, %v341_v14  ;;  %v351_v20 = vand.u32 2147483647, %v341_v14  ;;  %vm347_vm2 = vweird.f32 %v341_v14 }
 0x1b6   :  { %v354_v22 = vor.u32 1.1754944e-38, %v353_v18  ;;  %vm352_vm5 = vcmp.eq.f32.partialorder %v351_v20, 8.507059e+37 }
 0x1ba   :  { %v373_v15 = vpop.eup %372 }
 0x1bb   :  { %v343_v16 = vmul.f32 %v373_v15, %v341_v14  ;;  %vm348_vm1 = vweird.f32 %v373_v15 }
 0x1bc   :  { %vm349_vm3 = vmor %vm347_vm2, %vm348_vm1 }
 0x1bd   :  { %v344_v17 = vsub.f32 1.0, %v343_v16 }
 0x1bf   :  { %v345_v19 = vmul.f32 %v373_v15, %v344_v17 }
 0x1c1   :  { %v346_v21 = vadd.f32 %v373_v15, %v345_v19 }
 0x1c3   :  { %v350_v23 = vsel %vm349_vm3, %v373_v15, %v346_v21 }
 0x1c4   :  { %v355_v24 = vsel %vm352_vm5, %v354_v22, %v350_v23 }
 0x1c5   :  { %358 = vst.msk [vmem:[%s612_s7] sm:$0xff] %vm357_vm4, %v355_v24 }
 0x1c6   :  { %363 = vsyncpa [#allocation4], 1 }

</bundles_post_ra>
